<compile_context>
chip_gen: v7x
topology: tpu7x:2x2x1
jax: 0.10.0
libtpu: 0.0.40
codegen_flags: <defaults>
</compile_context>

<pallas_src>
import functools

import jax
import jax.numpy as jnp
from jax import lax
from jax.experimental import pallas as pl
from jax.experimental.pallas import tpu as pltpu

_EPS = 1e-6


def _vmem_capacity_bytes():
    try:
        return int(pltpu.get_tpu_info().vmem_capacity_bytes)
    except Exception:
        return 64 * 1024 * 1024  # conservative (v7x-sized) fallback


def _normalize(x, col_mean, *, mode, scale):
    """Shared elementwise math in f32. x: [TM, D], col_mean: [1, D]."""
    if mode == "PN-SI":
        xc = x - col_mean
        # rsqrt runs on the EUP (its own VLIW slot); `scale` folds into the
        # per-row [TM, 1] scalar so one broadcast multiply/elem remains.
        inv = lax.rsqrt(_EPS + jnp.sum(xc * xc, axis=1, keepdims=True))
        if scale != 1.0:
            inv = inv * scale
        return xc * inv
    else:  # "PN-SCS"
        inv = lax.rsqrt(_EPS + jnp.sum(x * x, axis=1, keepdims=True))
        if scale != 1.0:
            inv = inv * scale
        return x * inv - col_mean


def _pairnorm_resident_kernel(x_ref, o_ref, *, mode, scale, inv_n):
    """Whole array resident in VMEM: 1 HBM read + 1 HBM write."""
    x = x_ref[...].astype(jnp.float32)
    col_mean = jnp.sum(x, axis=0, keepdims=True) * inv_n
    o_ref[...] = _normalize(x, col_mean, mode=mode, scale=scale).astype(o_ref.dtype)


def _colsum_kernel(x_ref, psum_ref, *, tm, n_rows, ragged):
    """Pass 1: per-row-tile sublane-partial column sums -> [8, D] block."""
    x = x_ref[...].astype(jnp.float32)
    if ragged:
        # Last tile may extend past N: zero the out-of-bounds rows so they do
        # not contribute to the column sums (padded buffer content is garbage).
        tile = pl.program_id(0)
        row_ids = lax.broadcasted_iota(jnp.int32, (tm, 1), 0)
        x = jnp.where(row_ids < (n_rows - tile * tm), x, 0.0)
    d = x.shape[1]
    # Keep 8 sublane partials (full-vreg VALU adds, no per-tile cross-sublane
    # reduce); the tiny [num_tiles*8, D] array is reduced once in XLA.
    psum_ref[...] = x.reshape(tm // 8, 8, d).sum(axis=0)


def _normalize_kernel(cm_ref, x_ref, o_ref, *, mode, scale):
    """Pass 2: normalize one row tile with the precomputed column mean."""
    x = x_ref[...].astype(jnp.float32)
    o_ref[...] = _normalize(x, cm_ref[...], mode=mode, scale=scale).astype(o_ref.dtype)


def pairnorm(x, mode="PN-SI", scale=1.0, *, block_rows=None, force_tiled=False):
    """Pallas PairNorm forward. x: [N, D]."""
    assert mode in ("PN-SI", "PN-SCS"), mode
    # TODO(synk): the PyTorch docstring mentions a default 'PN' mode but the
    # module's own assert rejects it, so it is intentionally not implemented.
    n, d = x.shape
    itemsize = jnp.dtype(x.dtype).itemsize
    packing = max(8, 32 // itemsize)  # sublane packing: f32->8, bf16->16, i8->32
    capacity = _vmem_capacity_bytes()
    scale = float(scale)

    # ---- Resident single-pass fast path (generation-aware threshold). ------
    resident_limit = (capacity * 3) // 4           # ~96 MiB v5e/v6e, ~48 MiB v7x
    resident_est = n * d * (2 * itemsize + 3 * 4)  # in + out + ~3 f32 temps
    if resident_est <= resident_limit and not force_tiled:
        return pl.pallas_call(
            functools.partial(_pairnorm_resident_kernel, mode=mode, scale=scale,
                              inv_n=1.0 / n),
            out_shape=jax.ShapeDtypeStruct((n, d), x.dtype),
            in_specs=[pl.BlockSpec(memory_space=pltpu.MemorySpace.VMEM)],
            out_specs=pl.BlockSpec(memory_space=pltpu.MemorySpace.VMEM),
            compiler_params=pltpu.CompilerParams(vmem_limit_bytes=resident_limit),
        )(x)

    # ---- Tiled two-call path (row tiles, both passes megacore-parallel). ----
    vmem_limit = min((capacity * 3) // 4, 96 * 1024 * 1024)
    block_budget = min(8 * 1024 * 1024, vmem_limit // 6)  # per-block byte target
    if block_rows is None:
        block_rows = max(packing, block_budget // max(1, d * itemsize))
    tm = max(packing, (int(block_rows) // packing) * packing)
    tm = min(tm, ((n + packing - 1) // packing) * packing)
    num_tiles = pl.cdiv(n, tm)
    ragged = (n % tm) != 0
    # Guard for extremely wide D: make sure even the minimum (packing, D) block
    # fits the scoped VMEM (cap at physical capacity minus headroom).
    min_block_bytes = packing * d * itemsize
    vmem_limit = max(vmem_limit,
                     min(capacity - 4 * 1024 * 1024, 6 * min_block_bytes))
    compiler_params = pltpu.CompilerParams(
        dimension_semantics=("parallel",),
        vmem_limit_bytes=int(vmem_limit),
    )

    # Pass 1: per-tile sublane-partial column sums ([num_tiles*8, D], f32).
    psums = pl.pallas_call(
        functools.partial(_colsum_kernel, tm=tm, n_rows=n, ragged=ragged),
        out_shape=jax.ShapeDtypeStruct((num_tiles * 8, d), jnp.float32),
        grid=(num_tiles,),
        in_specs=[pl.BlockSpec((tm, d), lambda i: (i, 0))],
        out_specs=pl.BlockSpec((8, d), lambda i: (i, 0)),
        compiler_params=compiler_params,
    )(x)
    # Tiny XLA reduction of the partials -> exact column mean over the N rows.
    col_mean = jnp.sum(psums, axis=0, keepdims=True) * (1.0 / n)

    # Pass 2: normalize each row tile (garbage rows of a ragged last block are
    # per-row only and are dropped by the masked writeback).
    out = pl.pallas_call(
        functools.partial(_normalize_kernel, mode=mode, scale=scale),
        out_shape=jax.ShapeDtypeStruct((n, d), x.dtype),
        grid=(num_tiles,),
        in_specs=[pl.BlockSpec(memory_space=pltpu.MemorySpace.VMEM),  # col_mean
                  pl.BlockSpec((tm, d), lambda i: (i, 0))],
        out_specs=pl.BlockSpec((tm, d), lambda i: (i, 0)),
        compiler_params=compiler_params,
    )(col_mean, x)
    return out


def pairnorm_ref(x, mode="PN-SI", scale=1.0):
    """Pure-JAX reference mirroring the PyTorch module."""
    col_mean = x.mean(axis=0)
    if mode == "PN-SI":
        x = x - col_mean
        rownorm = jnp.sqrt(1e-6 + jnp.sum(x**2, axis=1, keepdims=True))
        x = scale * x / rownorm
    if mode == "PN-SCS":
        rownorm = jnp.sqrt(1e-6 + jnp.sum(x**2, axis=1, keepdims=True))
        x = scale * x / rownorm - col_mean
    return x


if __name__ == "__main__":
    key = jax.random.PRNGKey(0)
    k1, k2, k3 = jax.random.split(key, 3)

    # Small graph: 8 nodes x 32 features -> VMEM-resident single-pass path.
    x_small = jax.random.normal(k1, (8, 32), dtype=jnp.float32)
    # Aligned case forced onto the tiled two-call path (4 row tiles of 64).
    x_mid = jax.random.normal(k2, (256, 128), dtype=jnp.float32)
    # Ragged case (N and D unaligned) on the tiled path -> exercises masking.
    x_ragged = jax.random.normal(k3, (250, 96), dtype=jnp.float32)

    cases = [
        ("resident_small", x_small, 1.0, dict()),
        ("resident_scaled", x_small, 2.5, dict()),
        ("tiled_aligned", x_mid, 1.0, dict(block_rows=64, force_tiled=True)),
        ("tiled_ragged", x_ragged, 0.5, dict(block_rows=64, force_tiled=True)),
    ]

    ok = True
    for name, xv, sc, kw in cases:
        for mode in ("PN-SI", "PN-SCS"):
            out = jax.block_until_ready(pairnorm(xv, mode=mode, scale=sc, **kw))
            ref = pairnorm_ref(xv, mode=mode, scale=sc)
            if not jnp.allclose(out, ref, atol=1e-5, rtol=1e-5):
                ok = False
                err = float(jnp.max(jnp.abs(out - ref)))
                print(f"MISMATCH case={name} mode={mode}: max abs err {err}")

    if ok:
        print("KERNEL_OK")
</pallas_src>

<mosaic_0001>
module attributes {stable_mosaic.version = 11 : i64} {
  func.func @_pairnorm_resident_kernel(%arg0: memref<8x32xf32, #tpu.memory_space<vmem>>, %arg1: memref<8x32xf32, #tpu.memory_space<vmem>>) attributes {dimension_semantics = [], scalar_prefetch = 0 : i64, scratch_operands = 0 : i64, tpu.core_type = #tpu.core_type<tc>} {
    %c0 = arith.constant 0 : index
    %c0_0 = arith.constant 0 : index
    %0 = vector.load %arg0[%c0, %c0_0] : memref<8x32xf32, #tpu.memory_space<vmem>>, vector<8x32xf32>
    %cst = arith.constant dense<0.000000e+00> : vector<32xf32>
    %1 = vector.multi_reduction <add>, %0, %cst [0] : vector<8x32xf32> to vector<32xf32>
    %2 = vector.shape_cast %1 : vector<32xf32> to vector<1x32xf32>
    %cst_1 = arith.constant 1.250000e-01 : f32
    %3 = vector.broadcast %cst_1 : f32 to vector<1x32xf32>
    %4 = arith.mulf %2, %3 : vector<1x32xf32>
    %5 = vector.broadcast %4 : vector<1x32xf32> to vector<8x32xf32>
    %6 = arith.subf %0, %5 : vector<8x32xf32>
    %7 = arith.mulf %6, %6 : vector<8x32xf32>
    %cst_2 = arith.constant dense<0.000000e+00> : vector<8xf32>
    %8 = vector.multi_reduction <add>, %7, %cst_2 [1] : vector<8x32xf32> to vector<8xf32>
    %9 = vector.shape_cast %8 : vector<8xf32> to vector<8x1xf32>
    %cst_3 = arith.constant 9.99999997E-7 : f32
    %10 = vector.broadcast %cst_3 : f32 to vector<8x1xf32>
    %11 = arith.addf %10, %9 : vector<8x1xf32>
    %12 = math.rsqrt %11 : vector<8x1xf32>
    %13 = vector.broadcast %12 : vector<8x1xf32> to vector<8x32xf32>
    %14 = arith.mulf %6, %13 : vector<8x32xf32>
    %c0_4 = arith.constant 0 : index
    %c0_5 = arith.constant 0 : index
    %15 = vector.load %arg1[%c0_4, %c0_5] : memref<8x32xf32, #tpu.memory_space<vmem>>, vector<8x32xf32>
    tpu.vector_store %arg1[%c0_4, %c0_5], %14 {strides = array<i32>} : memref<8x32xf32, #tpu.memory_space<vmem>>, vector<8x32xf32>,
    return
  }
}

</mosaic_0001>

<bundles_post_ra>
// kernel: tpu_custom_call.1
= control target key start
LH: loop header
LB: loop body
LE: loop exit
PB: predicated region body
PF: predicated region fallthrough
CT: control target
= control target key end

     0   :  { %6 = vsyncpa [#allocation3], 0  ;;  %s146_s0 = inlined_call_operand.hbm [shape: f32[8,32], index: 0, kind: input, shape index: {}]   ;;  %s147_s1 = inlined_call_operand.hbm [shape: f32[8,32], index: 1, kind: output, shape index: {}]  }
   0x1   :  { %7 = vsyncpa [#allocation4], 0  ;;  %s107_s6 = smov [#allocation2]   ;;  %s59_s10 = scalar_lea.hbm %s146_s0, 128 }
   0x2   :  { %s14_s7 = sshll.u32 %s107_s6, 4  ;;  %p60_p0 = scmp.ne.s32.totalorder %s146_s0, %s59_s10  ;;  %s15_s7 = int_to_ptr.vmem [resolvable:$true] %s14_s7 }
   0x3   :  { %p63_p1 = scmp.lt.u32.totalorder %s59_s10, %s146_s0 }
   0x5   :  { %p65_p2 = pnand %p63_p1, %p60_p0 }
   0x7   :  { %68 = shalt.err (!%p65_p2)
}
   0x8   :  { %s69_s15 = scalar_lea.vmem %s15_s7, 128  ;;  %p74_p4 = scmp.lt.s32.totalorder %s15_s7, %s15_s7 }
   0x9   :  { %p70_p3 = scmp.ne.s32.totalorder %s15_s7, %s69_s15  ;;  %p75_p5 = scmp.lt.s32.totalorder %s69_s15, %s69_s15 }
   0xb   :  { %p76_p6 = por %p75_p5, %p74_p4 }
   0xd   :  { %p77_p7 = pnand %p76_p6, %p70_p3 }
   0xf   :  { %80 = shalt.err (!%p77_p7)
}
  0x10   :  { %17 = dma.hbm_to_vmem [thread:$0]  %s146_s0, 128, %s15_s7, [#allocation3]  }
  0x11   :  { %103 = dma.done.wait [#allocation3], 128  }
  0x12   :  { %104 = vsyncadd [#allocation3], 4294967168  ;;  %vm22_vm0 = vcmask 261120   ;;  %v21_v0 = vld [vmem:[#allocation2] sm:$0xff]  ;;  %s108_s0 = smov [#allocation5]  }
  0x13   :  { %v23_v1 = vsel %vm22_vm0, %v21_v0, 0.0  ;;  %s46_s18 = sshll.u32 %s108_s0, 4  ;;  %s47_s18 = int_to_ptr.vmem [resolvable:$true] %s46_s18 }
  0x14   :  { %v24_v2 = vrot.slane %v23_v1, 4  ;;  %s81_s19 = scalar_lea.vmem %s47_s18, 128  ;;  %p86_p9 = scmp.lt.s32.totalorder %s47_s18, %s47_s18 }
  0x15   :  { %p82_p8 = scmp.ne.s32.totalorder %s47_s18, %s81_s19  ;;  %p87_p10 = scmp.lt.s32.totalorder %s81_s19, %s81_s19 }
  0x16   :  { %v25_v3 = vadd.f32 %v24_v2, %v23_v1 }
  0x17   :  { %p88_p11 = por %p87_p10, %p86_p9 }
  0x18   :  { %v26_v4 = vrot.slane %v25_v3, 2 }
  0x19   :  { %p89_p12 = pnand %p88_p11, %p82_p8 }
  0x1a   :  { %v27_v5 = vadd.f32 %v26_v4, %v25_v3 }
  0x1c   :  { %v28_v6 = vrot.slane %v27_v5, 1 }
  0x1e   :  { %v29_v7 = vadd.f32 %v28_v6, %v27_v5 }
  0x20   :  { %v30_v8 = vmul.f32 0.125, %v29_v7 }
  0x22   :  { %v31_v9 = vsub.f32 %v21_v0, %v30_v8 }
  0x24   :  { %v32_v10 = vmul.f32 %v31_v9, %v31_v9 }
  0x26   :  { %v33_v11 = vsel %vm22_vm0, %v32_v10, 0.0 }
  0x27   :  { %34 = vadd.xlane.f32.xlu0 %v33_v11 }
  0xb4   :  { %v35_v12 = vpop.xlane.xlu0 %34 }
  0xb5   :  { %v36_v13 = vadd.f32 1e-06, %v35_v12 }
  0xb7   :  { %57 = vrsqrt.f32 %v36_v13 }
  0xc1   :  { %v58_v14 = vpop.eup %57 }
  0xc2   :  { %v38_v15 = vmul.f32 %v58_v14, %v31_v9 }
  0xc4   :  { %39 = vst.msk [vmem:[#allocation5] sm:$0xff] %vm22_vm0, %v38_v15 }
  0xc5   :  { %92 = shalt.err (!%p89_p12)
}
  0xc6   :  { %s93_s22 = scalar_lea.hbm %s147_s1, 128 }
  0xc7   :  { %p94_p13 = scmp.ne.s32.totalorder %s147_s1, %s93_s22  ;;  %p97_p0 = scmp.lt.u32.totalorder %s93_s22, %s147_s1 }
  0xc9   :  { %p99_p1 = pnand %p97_p0, %p94_p13 }
  0xcb   :  { %102 = shalt.err (!%p99_p1)
}
  0xcc   :  { %49 = dma.vmem_to_hbm [thread:$0]  %s47_s18, 128, %s147_s1, [#allocation4]  }
  0xcd   :  { %105 = dma.done.wait [#allocation4], 128  }
  0xce   :  { %106 = vsyncadd [#allocation4], 4294967168 }
  0xcf   :  { %53 = vsyncpa [#allocation3], 1 }
  0xd0   :  { %54 = vsyncpa [#allocation4], 1 }

</bundles_post_ra>
